<compile_context>
chip_gen: v7x
topology: tpu7x:2x2x1
jax: 0.10.0
libtpu: 0.0.40
codegen_flags: <defaults>
</compile_context>

<pallas_src>
import functools

import jax
import jax.numpy as jnp
from jax.experimental import pallas as pl
from jax.experimental.pallas import tpu as pltpu


# ----------------------------------------------------------------------------
# Kernel A: cosine-similarity sweep against the whole embedding table,
# tiled (and megacore-parallel) over the vocabulary axis V.
# ----------------------------------------------------------------------------
def _analogy_scores_kernel(anorm_ref, w_ref, scores_ref):
    a = anorm_ref[...]                                            # [B, D]
    w = w_ref[...]                                                # [tv, D]
    D = w.shape[1]

    # raw[b, v] = sum_d a[b, d] * w[v, d]   (contract last dims of both)
    raw = jax.lax.dot_general(
        a, w, (((1,), (1,)), ((), ())),
        preferred_element_type=jnp.float32)                       # [B, tv]

    # Per-row ||W|| as a [1, tv] row, computed with a ones-vector MXU
    # reduction so no sublane->lane relayout / transpose is needed, and no
    # [tv, D] b_norm temporary has to be materialized.
    wsq = w * w                                                   # [tv, D]
    ones_row = jnp.ones((1, D), dtype=jnp.float32)
    ssq_row = jax.lax.dot_general(
        ones_row, wsq, (((1,), (1,)), ((), ())),
        preferred_element_type=jnp.float32)                       # [1, tv]

    scores_ref[...] = raw * jax.lax.rsqrt(ssq_row)                # [B, tv]


def _choose_tv(V, D, B, *, max_tv=2048, vmem_budget_bytes=24 << 20):
    """Largest lane-dense V-tile that divides V and fits the VMEM budget.

    Live bytes/step ~= 2*tv*D*4 (double-buffered W) + tv*D*4 (w*w temp)
                       + 2*B*tv*4 (double-buffered scores tile).
    Budget of ~24 MiB keeps us safe on v7x (64 MiB physical VMEM) while still
    letting v5e/v6e stream big tiles.
    """
    bytes_per_tv = 3 * D * 4 + 2 * B * 4
    tv_cap = max(128, (vmem_budget_bytes // bytes_per_tv) // 128 * 128)
    tv = min(V, max_tv, tv_cap)
    tv = max(128, (tv // 128) * 128)
    while tv > 128 and V % tv != 0:
        tv -= 128
    if V % tv != 0:
        tv = V          # small / odd vocab: single full-width tile
    return tv


def analogy_scores(a_norm, weight, *, tv=None):
    B, D = a_norm.shape
    V, D2 = weight.shape
    assert D == D2
    if tv is None:
        tv = _choose_tv(V, D, B)
    assert V % tv == 0
    grid = (V // tv,)

    # Raise the scoped VMEM limit above the 16/32 MiB defaults if needed.
    est_bytes = 3 * tv * D * 4 + 2 * B * tv * 4 + 2 * B * D * 4
    vmem_limit = int(min(64 << 20, max(32 << 20, est_bytes + (4 << 20))))

    return pl.pallas_call(
        _analogy_scores_kernel,
        out_shape=jax.ShapeDtypeStruct((B, V), jnp.float32),
        grid_spec=pltpu.PrefetchScalarGridSpec(
            num_scalar_prefetch=0,
            grid=grid,
            in_specs=[
                pl.BlockSpec((B, D), lambda v: (0, 0)),
                pl.BlockSpec((tv, D), lambda v: (v, 0)),
            ],
            out_specs=pl.BlockSpec((B, tv), lambda v: (0, v)),
        ),
        compiler_params=pltpu.CompilerParams(
            dimension_semantics=("parallel",),
            vmem_limit_bytes=vmem_limit),
    )(a_norm, weight)


# ----------------------------------------------------------------------------
# Kernel B (single launch): row-normalize offset_trick and e3_emb, build the
# B x B self-similarity matrices, take the index of the second-largest
# similarity per row (== argsort(...)[:, -2]), and gather the corresponding
# normalized rows via an MXU-friendly one-hot matmul.
# ----------------------------------------------------------------------------
def _norm_second_neighbor_kernel(off_ref, e3_ref,
                                 anorm_ref, e3norm_ref, tl_ref, tr_ref):
    def process(x, norm_out_ref, t_out_ref):
        xn = x * jax.lax.rsqrt(jnp.sum(x * x, axis=1, keepdims=True))  # [B, D]
        norm_out_ref[...] = xn

        sim = jax.lax.dot_general(
            xn, xn, (((1,), (1,)), ((), ())),
            preferred_element_type=jnp.float32)                        # [B, B]
        B = sim.shape[0]
        col = jax.lax.broadcasted_iota(jnp.int32, sim.shape, 1)        # [B, B]

        # index of the max per row (lowest index on exact ties)
        max1 = jnp.max(sim, axis=1, keepdims=True)
        idx1 = jnp.min(jnp.where(sim == max1, col, B), axis=1, keepdims=True)
        # mask it out, take the max again -> second-largest index
        neg = jnp.float32(-3.4e38)
        sim2 = jnp.where(col == idx1, neg, sim)
        max2 = jnp.max(sim2, axis=1, keepdims=True)
        idx2 = jnp.min(jnp.where(sim2 == max2, col, B), axis=1, keepdims=True)

        # gather rows via a one-hot matmul (no dynamic gather needed)
        onehot = (col == idx2).astype(jnp.float32)                     # [B, B]
        t_out_ref[...] = jnp.dot(onehot, xn,
                                 preferred_element_type=jnp.float32)

    process(off_ref[...], anorm_ref, tl_ref)
    process(e3_ref[...], e3norm_ref, tr_ref)


def norm_and_second_neighbors(offset_trick, e3_emb):
    B, D = offset_trick.shape
    bd = jax.ShapeDtypeStruct((B, D), jnp.float32)
    full = pl.BlockSpec((B, D), lambda i: (0, 0))
    return pl.pallas_call(
        _norm_second_neighbor_kernel,
        out_shape=(bd, bd, bd, bd),            # a_norm, e3_norm, t_l, t_r
        grid=(1,),
        in_specs=[full, full],
        out_specs=[full, full, full, full],
    )(offset_trick, e3_emb)


# ----------------------------------------------------------------------------
# Forward wrapper (training branch of AnalogyModel.forward)
# ----------------------------------------------------------------------------
@functools.partial(jax.jit, static_argnames=())
def analogy_forward_train(weight, input_ids, distances):
    e1 = input_ids[:, 0]
    e2 = input_ids[:, 1]
    e3 = input_ids[:, 2]
    e4 = input_ids[:, 3]

    # embedding gathers (glue)
    e1_emb = weight[e1]
    e2_emb = weight[e2]
    e3_emb = weight[e3]
    e4_emb = weight[e4]

    offset_trick = e1_emb - e2_emb + e4_emb

    a_norm, e3_norm, t_l, t_r = norm_and_second_neighbors(offset_trick, e3_emb)
    scores = analogy_scores(a_norm, weight)

    return {
        "e1": e1, "e2": e2, "e3": e3, "e4": e4,
        "offset_trick": offset_trick,
        "scores": scores,
        "distances": distances,
        "t_l": t_l,
        "t_r": t_r,
    }


# ----------------------------------------------------------------------------
# Pure-JAX reference (mirrors the PyTorch code) for a sanity check.
# ----------------------------------------------------------------------------
def _reference_forward(weight, input_ids, distances):
    e1, e2, e3, e4 = (input_ids[:, i] for i in range(4))
    e1e, e2e, e3e, e4e = weight[e1], weight[e2], weight[e3], weight[e4]
    offset = e1e - e2e + e4e
    a_norm = offset / jnp.linalg.norm(offset, axis=1, keepdims=True)
    t_l = a_norm[jnp.argsort(a_norm @ a_norm.T, axis=1)[:, -2]]
    e3n = e3e / jnp.linalg.norm(e3e, axis=1, keepdims=True)
    t_r = e3n[jnp.argsort(e3n @ e3n.T, axis=1)[:, -2]]
    b_norm = weight / jnp.linalg.norm(weight, axis=1, keepdims=True)
    scores = a_norm @ b_norm.T
    return offset, scores, t_l, t_r


if __name__ == "__main__":
    B, D, V = 8, 128, 512

    key = jax.random.PRNGKey(0)
    k_w, k_ids, k_dist = jax.random.split(key, 3)
    weight = jax.random.normal(k_w, (V, D), dtype=jnp.float32)
    input_ids = jax.random.randint(k_ids, (B, 4), 0, V, dtype=jnp.int32)
    distances = jax.random.uniform(k_dist, (B,), dtype=jnp.float32)

    out = analogy_forward_train(weight, input_ids, distances)
    jax.block_until_ready(out)

    # sanity check against the plain-JAX reference
    ref_offset, ref_scores, ref_tl, ref_tr = _reference_forward(
        weight, input_ids, distances)
    assert jnp.allclose(out["offset_trick"], ref_offset, atol=1e-5)
    assert jnp.allclose(out["scores"], ref_scores, atol=1e-4)
    assert jnp.allclose(out["t_l"], ref_tl, atol=1e-5)
    assert jnp.allclose(out["t_r"], ref_tr, atol=1e-5)

    print("KERNEL_OK")
</pallas_src>

<mosaic_0001>
module attributes {stable_mosaic.version = 11 : i64} {
  func.func @_norm_second_neighbor_kernel(%arg0: i32, %arg1: memref<8x128xf32, #tpu.memory_space<vmem>>, %arg2: memref<8x128xf32, #tpu.memory_space<vmem>>, %arg3: memref<8x128xf32, #tpu.memory_space<vmem>>, %arg4: memref<8x128xf32, #tpu.memory_space<vmem>>, %arg5: memref<8x128xf32, #tpu.memory_space<vmem>>, %arg6: memref<8x128xf32, #tpu.memory_space<vmem>>) attributes {dimension_semantics = [#tpu.dimension_semantics<arbitrary>], iteration_bounds = array<i64: 1>, scalar_prefetch = 0 : i64, scratch_operands = 0 : i64, tpu.core_type = #tpu.core_type<tc>, window_params = [{pipeline_mode = #tpu.pipeline_mode<synchronous>, transform_indices = @transform_0, window_bounds = array<i64: 8, 128>}, {pipeline_mode = #tpu.pipeline_mode<synchronous>, transform_indices = @transform_1, window_bounds = array<i64: 8, 128>}, {pipeline_mode = #tpu.pipeline_mode<synchronous>, transform_indices = @transform_2, window_bounds = array<i64: 8, 128>}, {pipeline_mode = #tpu.pipeline_mode<synchronous>, transform_indices = @transform_3, window_bounds = array<i64: 8, 128>}, {pipeline_mode = #tpu.pipeline_mode<synchronous>, transform_indices = @transform_4, window_bounds = array<i64: 8, 128>}, {pipeline_mode = #tpu.pipeline_mode<synchronous>, transform_indices = @transform_5, window_bounds = array<i64: 8, 128>}]} {
    %c0 = arith.constant 0 : index
    %c0_0 = arith.constant 0 : index
    %0 = vector.load %arg1[%c0, %c0_0] : memref<8x128xf32, #tpu.memory_space<vmem>>, vector<8x128xf32>
    %1 = arith.mulf %0, %0 : vector<8x128xf32>
    %cst = arith.constant dense<0.000000e+00> : vector<8xf32>
    %2 = vector.multi_reduction <add>, %1, %cst [1] : vector<8x128xf32> to vector<8xf32>
    %3 = vector.shape_cast %2 : vector<8xf32> to vector<8x1xf32>
    %4 = math.rsqrt %3 : vector<8x1xf32>
    %5 = vector.broadcast %4 : vector<8x1xf32> to vector<8x128xf32>
    %6 = arith.mulf %0, %5 : vector<8x128xf32>
    %c0_1 = arith.constant 0 : index
    %c0_2 = arith.constant 0 : index
    %7 = vector.load %arg3[%c0_1, %c0_2] : memref<8x128xf32, #tpu.memory_space<vmem>>, vector<8x128xf32>
    tpu.vector_store %arg3[%c0_1, %c0_2], %6 {strides = array<i32>} : memref<8x128xf32, #tpu.memory_space<vmem>>, vector<8x128xf32>,
    %cst_3 = arith.constant dense<0.000000e+00> : vector<8x8xf32>
    %8 = tpu.matmul %6, %6, %cst_3 {dimension_numbers = #tpu.dot_dimension_numbers<[1], [1], [0], [0], [0, 0, 1, 0], [], []>} : vector<8x128xf32>, vector<8x128xf32>, vector<8x8xf32> -> vector<8x8xf32>
    %9 = tpu.iota {dimensions = array<i32: 1>} : vector<8x8xi32>
    %cst_4 = arith.constant dense<0xFF800000> : vector<8xf32>
    %10 = vector.multi_reduction <maximumf>, %8, %cst_4 [1] : vector<8x8xf32> to vector<8xf32>
    %11 = vector.shape_cast %10 : vector<8xf32> to vector<8x1xf32>
    %12 = vector.broadcast %11 : vector<8x1xf32> to vector<8x8xf32>
    %13 = arith.cmpf oeq, %8, %12 : vector<8x8xf32>
    %c8_i32 = arith.constant 8 : i32
    %14 = vector.broadcast %c8_i32 : i32 to vector<8x8xi32>
    %15 = arith.select %13, %9, %14 : vector<8x8xi1>, vector<8x8xi32>
    %cst_5 = arith.constant dense<2147483647> : vector<8xi32>
    %16 = vector.multi_reduction <minsi>, %15, %cst_5 [1] : vector<8x8xi32> to vector<8xi32>
    %17 = vector.shape_cast %16 : vector<8xi32> to vector<8x1xi32>
    %18 = vector.broadcast %17 : vector<8x1xi32> to vector<8x8xi32>
    %19 = arith.cmpi eq, %9, %18 : vector<8x8xi32>
    %cst_6 = arith.constant -3.400000e+38 : f32
    %20 = vector.broadcast %cst_6 : f32 to vector<8x8xf32>
    %21 = arith.select %19, %20, %8 : vector<8x8xi1>, vector<8x8xf32>
    %cst_7 = arith.constant dense<0xFF800000> : vector<8xf32>
    %22 = vector.multi_reduction <maximumf>, %21, %cst_7 [1] : vector<8x8xf32> to vector<8xf32>
    %23 = vector.shape_cast %22 : vector<8xf32> to vector<8x1xf32>
    %24 = vector.broadcast %23 : vector<8x1xf32> to vector<8x8xf32>
    %25 = arith.cmpf oeq, %21, %24 : vector<8x8xf32>
    %c8_i32_8 = arith.constant 8 : i32
    %26 = vector.broadcast %c8_i32_8 : i32 to vector<8x8xi32>
    %27 = arith.select %25, %9, %26 : vector<8x8xi1>, vector<8x8xi32>
    %cst_9 = arith.constant dense<2147483647> : vector<8xi32>
    %28 = vector.multi_reduction <minsi>, %27, %cst_9 [1] : vector<8x8xi32> to vector<8xi32>
    %29 = vector.shape_cast %28 : vector<8xi32> to vector<8x1xi32>
    %30 = vector.broadcast %29 : vector<8x1xi32> to vector<8x8xi32>
    %31 = arith.cmpi eq, %9, %30 : vector<8x8xi32>
    %32 = arith.extui %31 : vector<8x8xi1> to vector<8x8xi32>
    %33 = arith.sitofp %32 : vector<8x8xi32> to vector<8x8xf32>
    %cst_10 = arith.constant dense<0.000000e+00> : vector<8x128xf32>
    %34 = tpu.matmul %33, %6, %cst_10 {dimension_numbers = #tpu.dot_dimension_numbers<[1], [0], [0], [1], [0, 0, 1, 1], [], []>} : vector<8x8xf32>, vector<8x128xf32>, vector<8x128xf32> -> vector<8x128xf32>
    %c0_11 = arith.constant 0 : index
    %c0_12 = arith.constant 0 : index
    %35 = vector.load %arg5[%c0_11, %c0_12] : memref<8x128xf32, #tpu.memory_space<vmem>>, vector<8x128xf32>
    tpu.vector_store %arg5[%c0_11, %c0_12], %34 {strides = array<i32>} : memref<8x128xf32, #tpu.memory_space<vmem>>, vector<8x128xf32>,
    %c0_13 = arith.constant 0 : index
    %c0_14 = arith.constant 0 : index
    %36 = vector.load %arg2[%c0_13, %c0_14] : memref<8x128xf32, #tpu.memory_space<vmem>>, vector<8x128xf32>
    %37 = arith.mulf %36, %36 : vector<8x128xf32>
    %cst_15 = arith.constant dense<0.000000e+00> : vector<8xf32>
    %38 = vector.multi_reduction <add>, %37, %cst_15 [1] : vector<8x128xf32> to vector<8xf32>
    %39 = vector.shape_cast %38 : vector<8xf32> to vector<8x1xf32>
    %40 = math.rsqrt %39 : vector<8x1xf32>
    %41 = vector.broadcast %40 : vector<8x1xf32> to vector<8x128xf32>
    %42 = arith.mulf %36, %41 : vector<8x128xf32>
    %c0_16 = arith.constant 0 : index
    %c0_17 = arith.constant 0 : index
    %43 = vector.load %arg4[%c0_16, %c0_17] : memref<8x128xf32, #tpu.memory_space<vmem>>, vector<8x128xf32>
    tpu.vector_store %arg4[%c0_16, %c0_17], %42 {strides = array<i32>} : memref<8x128xf32, #tpu.memory_space<vmem>>, vector<8x128xf32>,
    %cst_18 = arith.constant dense<0.000000e+00> : vector<8x8xf32>
    %44 = tpu.matmul %42, %42, %cst_18 {dimension_numbers = #tpu.dot_dimension_numbers<[1], [1], [0], [0], [0, 0, 1, 0], [], []>} : vector<8x128xf32>, vector<8x128xf32>, vector<8x8xf32> -> vector<8x8xf32>
    %45 = tpu.iota {dimensions = array<i32: 1>} : vector<8x8xi32>
    %cst_19 = arith.constant dense<0xFF800000> : vector<8xf32>
    %46 = vector.multi_reduction <maximumf>, %44, %cst_19 [1] : vector<8x8xf32> to vector<8xf32>
    %47 = vector.shape_cast %46 : vector<8xf32> to vector<8x1xf32>
    %48 = vector.broadcast %47 : vector<8x1xf32> to vector<8x8xf32>
    %49 = arith.cmpf oeq, %44, %48 : vector<8x8xf32>
    %c8_i32_20 = arith.constant 8 : i32
    %50 = vector.broadcast %c8_i32_20 : i32 to vector<8x8xi32>
    %51 = arith.select %49, %45, %50 : vector<8x8xi1>, vector<8x8xi32>
    %cst_21 = arith.constant dense<2147483647> : vector<8xi32>
    %52 = vector.multi_reduction <minsi>, %51, %cst_21 [1] : vector<8x8xi32> to vector<8xi32>
    %53 = vector.shape_cast %52 : vector<8xi32> to vector<8x1xi32>
    %54 = vector.broadcast %53 : vector<8x1xi32> to vector<8x8xi32>
    %55 = arith.cmpi eq, %45, %54 : vector<8x8xi32>
    %cst_22 = arith.constant -3.400000e+38 : f32
    %56 = vector.broadcast %cst_22 : f32 to vector<8x8xf32>
    %57 = arith.select %55, %56, %44 : vector<8x8xi1>, vector<8x8xf32>
    %cst_23 = arith.constant dense<0xFF800000> : vector<8xf32>
    %58 = vector.multi_reduction <maximumf>, %57, %cst_23 [1] : vector<8x8xf32> to vector<8xf32>
    %59 = vector.shape_cast %58 : vector<8xf32> to vector<8x1xf32>
    %60 = vector.broadcast %59 : vector<8x1xf32> to vector<8x8xf32>
    %61 = arith.cmpf oeq, %57, %60 : vector<8x8xf32>
    %c8_i32_24 = arith.constant 8 : i32
    %62 = vector.broadcast %c8_i32_24 : i32 to vector<8x8xi32>
    %63 = arith.select %61, %45, %62 : vector<8x8xi1>, vector<8x8xi32>
    %cst_25 = arith.constant dense<2147483647> : vector<8xi32>
    %64 = vector.multi_reduction <minsi>, %63, %cst_25 [1] : vector<8x8xi32> to vector<8xi32>
    %65 = vector.shape_cast %64 : vector<8xi32> to vector<8x1xi32>
    %66 = vector.broadcast %65 : vector<8x1xi32> to vector<8x8xi32>
    %67 = arith.cmpi eq, %45, %66 : vector<8x8xi32>
    %68 = arith.extui %67 : vector<8x8xi1> to vector<8x8xi32>
    %69 = arith.sitofp %68 : vector<8x8xi32> to vector<8x8xf32>
    %cst_26 = arith.constant dense<0.000000e+00> : vector<8x128xf32>
    %70 = tpu.matmul %69, %42, %cst_26 {dimension_numbers = #tpu.dot_dimension_numbers<[1], [0], [0], [1], [0, 0, 1, 1], [], []>} : vector<8x8xf32>, vector<8x128xf32>, vector<8x128xf32> -> vector<8x128xf32>
    %c0_27 = arith.constant 0 : index
    %c0_28 = arith.constant 0 : index
    %71 = vector.load %arg6[%c0_27, %c0_28] : memref<8x128xf32, #tpu.memory_space<vmem>>, vector<8x128xf32>
    tpu.vector_store %arg6[%c0_27, %c0_28], %70 {strides = array<i32>} : memref<8x128xf32, #tpu.memory_space<vmem>>, vector<8x128xf32>,
    return
  }
  func.func @transform_0(%arg0: i32) -> (i32, i32) {
    %c0_i32 = arith.constant 0 : i32
    %c0_i32_0 = arith.constant 0 : i32
    %c0_i32_1 = arith.constant 0 : i32
    return %c0_i32, %c0_i32_0 : i32, i32
  }
  func.func @transform_1(%arg0: i32) -> (i32, i32) {
    %c0_i32 = arith.constant 0 : i32
    %c0_i32_0 = arith.constant 0 : i32
    %c0_i32_1 = arith.constant 0 : i32
    return %c0_i32, %c0_i32_0 : i32, i32
  }
  func.func @transform_2(%arg0: i32) -> (i32, i32) {
    %c0_i32 = arith.constant 0 : i32
    %c0_i32_0 = arith.constant 0 : i32
    %c0_i32_1 = arith.constant 0 : i32
    return %c0_i32, %c0_i32_0 : i32, i32
  }
  func.func @transform_3(%arg0: i32) -> (i32, i32) {
    %c0_i32 = arith.constant 0 : i32
    %c0_i32_0 = arith.constant 0 : i32
    %c0_i32_1 = arith.constant 0 : i32
    return %c0_i32, %c0_i32_0 : i32, i32
  }
  func.func @transform_4(%arg0: i32) -> (i32, i32) {
    %c0_i32 = arith.constant 0 : i32
    %c0_i32_0 = arith.constant 0 : i32
    %c0_i32_1 = arith.constant 0 : i32
    return %c0_i32, %c0_i32_0 : i32, i32
  }
  func.func @transform_5(%arg0: i32) -> (i32, i32) {
    %c0_i32 = arith.constant 0 : i32
    %c0_i32_0 = arith.constant 0 : i32
    %c0_i32_1 = arith.constant 0 : i32
    return %c0_i32, %c0_i32_0 : i32, i32
  }
}

module attributes {stable_mosaic.version = 11 : i64} {
  func.func @_analogy_scores_kernel(%arg0: i32, %arg1: memref<8x128xf32, #tpu.memory_space<vmem>>, %arg2: memref<512x128xf32, #tpu.memory_space<vmem>>, %arg3: memref<8x512xf32, #tpu.memory_space<vmem>>) attributes {dimension_semantics = [#tpu.dimension_semantics<parallel>], iteration_bounds = array<i64: 1>, scalar_prefetch = 0 : i64, scratch_operands = 0 : i64, tpu.core_type = #tpu.core_type<tc>, window_params = [{pipeline_mode = #tpu.pipeline_mode<synchronous>, transform_indices = @transform_0, window_bounds = array<i64: 8, 128>}, {transform_indices = @transform_1, window_bounds = array<i64: 512, 128>}, {transform_indices = @transform_2, window_bounds = array<i64: 8, 512>}]} {
    %c0 = arith.constant 0 : index
    %c0_0 = arith.constant 0 : index
    %0 = vector.load %arg1[%c0, %c0_0] : memref<8x128xf32, #tpu.memory_space<vmem>>, vector<8x128xf32>
    %c0_1 = arith.constant 0 : index
    %c0_2 = arith.constant 0 : index
    %1 = vector.load %arg2[%c0_1, %c0_2] : memref<512x128xf32, #tpu.memory_space<vmem>>, vector<512x128xf32>
    %cst = arith.constant dense<0.000000e+00> : vector<8x512xf32>
    %2 = tpu.matmul %0, %1, %cst {dimension_numbers = #tpu.dot_dimension_numbers<[1], [1], [0], [0], [0, 0, 1, 0], [], []>} : vector<8x128xf32>, vector<512x128xf32>, vector<8x512xf32> -> vector<8x512xf32>
    %3 = arith.mulf %1, %1 : vector<512x128xf32>
    %cst_3 = arith.constant 1.000000e+00 : f32
    %4 = vector.broadcast %cst_3 : f32 to vector<1x128xf32>
    %cst_4 = arith.constant dense<0.000000e+00> : vector<1x512xf32>
    %5 = tpu.matmul %4, %3, %cst_4 {dimension_numbers = #tpu.dot_dimension_numbers<[1], [1], [0], [0], [0, 0, 1, 0], [], []>} : vector<1x128xf32>, vector<512x128xf32>, vector<1x512xf32> -> vector<1x512xf32>
    %6 = math.rsqrt %5 : vector<1x512xf32>
    %7 = vector.broadcast %6 : vector<1x512xf32> to vector<8x512xf32>
    %8 = arith.mulf %2, %7 : vector<8x512xf32>
    %c0_5 = arith.constant 0 : index
    %c0_6 = arith.constant 0 : index
    %9 = vector.load %arg3[%c0_5, %c0_6] : memref<8x512xf32, #tpu.memory_space<vmem>>, vector<8x512xf32>
    tpu.vector_store %arg3[%c0_5, %c0_6], %8 {strides = array<i32>} : memref<8x512xf32, #tpu.memory_space<vmem>>, vector<8x512xf32>,
    return
  }
  func.func @transform_0(%arg0: i32) -> (i32, i32) {
    %c0_i32 = arith.constant 0 : i32
    %c0_i32_0 = arith.constant 0 : i32
    %c0_i32_1 = arith.constant 0 : i32
    return %c0_i32, %c0_i32_0 : i32, i32
  }
  func.func @transform_1(%arg0: i32) -> (i32, i32) {
    %c0_i32 = arith.constant 0 : i32
    %c0_i32_0 = arith.constant 0 : i32
    return %arg0, %c0_i32 : i32, i32
  }
  func.func @transform_2(%arg0: i32) -> (i32, i32) {
    %c0_i32 = arith.constant 0 : i32
    %c0_i32_0 = arith.constant 0 : i32
    return %c0_i32, %arg0 : i32, i32
  }
}

</mosaic_0001>

<bundles_post_ra>
// kernel: analogy_forward_train.3
= control target key start
LH: loop header
LB: loop body
LE: loop exit
PB: predicated region body
PF: predicated region fallthrough
CT: control target
= control target key end

     0   :  { %7 = vsyncpa [#allocation3], 0  ;;  %s1184_s0 = inlined_call_operand.vmem [shape: f32[8,128], index: 0, kind: input, shape index: {}]   ;;  %s1185_s1 = inlined_call_operand.hbm [shape: f32[512,128], index: 1, kind: input, shape index: {}]   ;;  %s1186_s2 = inlined_call_operand.hbm [shape: f32[8,512], index: 2, kind: output, shape index: {}]  }
   0x1   :  { %8 = vsyncpa [#allocation4], 0  ;;  %s807_s9 = smov [#allocation2]   ;;  %s759_s13 = scalar_lea.hbm %s1185_s1, 8192 }
   0x2   :  { %s16_s10 = sshll.u32 %s807_s9, 4  ;;  %p760_p0 = scmp.ne.s32.totalorder %s1185_s1, %s759_s13  ;;  %s17_s10 = int_to_ptr.vmem [resolvable:$true] %s16_s10 }
   0x3   :  { %p763_p1 = scmp.lt.u32.totalorder %s759_s13, %s1185_s1 }
   0x5   :  { %p765_p2 = pnand %p763_p1, %p760_p0 }
   0x7   :  { %768 = shalt.err (!%p765_p2)
}
   0x8   :  { %s769_s18 = scalar_lea.vmem %s17_s10, 8192  ;;  %p774_p4 = scmp.lt.s32.totalorder %s17_s10, %s17_s10 }
   0x9   :  { %p770_p3 = scmp.ne.s32.totalorder %s17_s10, %s769_s18  ;;  %p775_p5 = scmp.lt.s32.totalorder %s769_s18, %s769_s18 }
   0xb   :  { %p776_p6 = por %p775_p5, %p774_p4 }
   0xd   :  { %p777_p7 = pnand %p776_p6, %p770_p3 }
   0xf   :  { %780 = shalt.err (!%p777_p7)
}
  0x10   :  { %s808_s19 = smov 128   ;;  %s809_s20 = smov 8  }
  0x11   :  { %22 = dma.hbm_to_vmem [thread:$0]  %s1185_s1, 8192, %s17_s10, [#allocation3], %s808_s19, %s808_s19, %s809_s20  }
  0x12   :  { %803 = dma.done.wait [#allocation3], 8192  }
  0x13   :  { %804 = vsyncadd [#allocation3], 4294959104  ;;  %v839_v0 = vld [vmem:[#allocation2 + $0x80] sm:$0xff]  ;;  %v841_v1 = vld [vmem:[#allocation2 + $0x88] sm:$0xff] }
  0x14   :  { %v843_v2 = vld [vmem:[#allocation2 + $0x180] sm:$0xff]  ;;  %v618_v3 = vpack.c.bf16 %v841_v1, %v839_v0  ;;  %v847_v4 = vld [vmem:[#allocation2 + $0x188] sm:$0xff]  ;;  %v861_v11 = vld [vmem:[#allocation2 + $0x90] sm:$0xff] }
  0x15   :  { %v849_v5 = vld [vmem:[#allocation2] sm:$0xff]  ;;  %v851_v6 = vld [vmem:[#allocation2 + $0x8] sm:$0xff]  ;;  %v650_v7 = vpack.c.bf16 %v847_v4, %v843_v2  ;;  %v865_v13 = vld [vmem:[#allocation2 + $0x98] sm:$0xff] }
  0x16   :  { %v620_v8 = vpack.c.bf16 %v851_v6, %v849_v5  ;;  %v857_v9 = vld [vmem:[#allocation2 + $0x100] sm:$0xff]  ;;  %v859_v10 = vld [vmem:[#allocation2 + $0x108] sm:$0xff]  ;;  %619 = vmatprep.subr.bf16.mxu0 %v618_v3  ;;  %v867_v14 = vld [vmem:[#allocation2 + $0x190] sm:$0xff]  ;;  %v622_v16 = vpack.c.bf16 %v865_v13, %v861_v11 }
  0x17   :  { %v652_v12 = vpack.c.bf16 %v859_v10, %v857_v9  ;;  %v869_v15 = vld [vmem:[#allocation2 + $0x198] sm:$0xff]  ;;  %651 = vmatprep.subr.bf16.mxu1 %v650_v7  ;;  %v875_v18 = vld [vmem:[#allocation2 + $0x10] sm:$0xff]  ;;  %v883_v22 = vld [vmem:[#allocation2 + $0xa0] sm:$0xff] }
  0x18   :  { %621 = vmatpush3.bf16.xpose.msra.mxu0 %v620_v8  ;;  %v654_v17 = vpack.c.bf16 %v869_v15, %v867_v14  ;;  %v877_v19 = vld [vmem:[#allocation2 + $0x18] sm:$0xff]  ;;  %v879_v20 = vld [vmem:[#allocation2 + $0x110] sm:$0xff]  ;;  %v885_v23 = vld [vmem:[#allocation2 + $0xa8] sm:$0xff] }
  0x19   :  { %653 = vmatpush3.bf16.xpose.msra.mxu1 %v652_v12  ;;  %623 = vmatprep.subr.bf16.mxu0 %v622_v16  ;;  %v881_v21 = vld [vmem:[#allocation2 + $0x118] sm:$0xff]  ;;  %v887_v24 = vld [vmem:[#allocation2 + $0x1a0] sm:$0xff]  ;;  %v889_v25 = vld [vmem:[#allocation2 + $0x1a8] sm:$0xff]  ;;  %v624_v26 = vpack.c.bf16 %v877_v19, %v875_v18  ;;  %v626_v28 = vpack.c.bf16 %v885_v23, %v883_v22 }
  0x1a   :  { %655 = vmatprep.subr.bf16.mxu1 %v654_v17  ;;  %v656_v27 = vpack.c.bf16 %v881_v21, %v879_v20  ;;  %v658_v29 = vpack.c.bf16 %v889_v25, %v887_v24  ;;  %v899_v30 = vld [vmem:[#allocation2 + $0x20] sm:$0xff]  ;;  %v901_v31 = vld [vmem:[#allocation2 + $0x28] sm:$0xff]  ;;  %v907_v34 = vld [vmem:[#allocation2 + $0xb0] sm:$0xff] }
  0x1b   :  { %v903_v32 = vld [vmem:[#allocation2 + $0x120] sm:$0xff]  ;;  %v905_v33 = vld [vmem:[#allocation2 + $0x128] sm:$0xff]  ;;  %v909_v35 = vld [vmem:[#allocation2 + $0xb8] sm:$0xff]  ;;  %v628_v38 = vpack.c.bf16 %v901_v31, %v899_v30 }
  0x1c   :  { %v911_v36 = vld [vmem:[#allocation2 + $0x1b0] sm:$0xff]  ;;  %v913_v37 = vld [vmem:[#allocation2 + $0x1b8] sm:$0xff]  ;;  %v660_v39 = vpack.c.bf16 %v905_v33, %v903_v32  ;;  %v630_v40 = vpack.c.bf16 %v909_v35, %v907_v34  ;;  %v932_v45 = vld [vmem:[%s1184_s0] sm:$0xff]  ;;  %s811_s0 = smov [#allocation5]  }
  0x1d   :  { %v662_v41 = vpack.c.bf16 %v913_v37, %v911_v36  ;;  %v923_v42 = vld [vmem:[#allocation2 + $0x30] sm:$0xff]  ;;  %v925_v43 = vld [vmem:[#allocation2 + $0x38] sm:$0xff]  ;;  %v936_v47 = vld [vmem:[#allocation2 + $0xc0] sm:$0xff]  ;;  %514 = vmatprep.mubr.f32.mxu0 %v932_v45  ;;  %548 = vmatprep.mubr.f32.mxu1 %v932_v45  ;;  %s473_s24 = sshll.u32 %s811_s0, 4  ;;  %s474_s24 = int_to_ptr.vmem [resolvable:$true] %s473_s24 }
  0x1e   :  { %v927_v44 = vld [vmem:[#allocation2 + $0x130] sm:$0xff]  ;;  %v934_v46 = vld [vmem:[#allocation2 + $0x138] sm:$0xff]  ;;  %v938_v48 = vld [vmem:[#allocation2 + $0xc8] sm:$0xff]  ;;  %v632_v51 = vpack.c.bf16 %v925_v43, %v923_v42  ;;  %s781_s25 = scalar_lea.vmem %s474_s24, 512  ;;  %p786_p9 = scmp.lt.s32.totalorder %s474_s24, %s474_s24 }
  0x1f   :  { %v941_v49 = vld [vmem:[#allocation2 + $0x1c0] sm:$0xff]  ;;  %v943_v50 = vld [vmem:[#allocation2 + $0x1c8] sm:$0xff]  ;;  %v664_v52 = vpack.c.bf16 %v934_v46, %v927_v44  ;;  %v634_v53 = vpack.c.bf16 %v938_v48, %v936_v47  ;;  %v962_v59 = vld [vmem:[#allocation2 + $0xd0] sm:$0xff]  ;;  %p782_p8 = scmp.ne.s32.totalorder %s474_s24, %s781_s25  ;;  %p787_p10 = scmp.lt.s32.totalorder %s781_s25, %s781_s25 }
  0x20   :  { %625 = vmatpush3.bf16.xpose.msra.mxu0 %v624_v26  ;;  %v666_v54 = vpack.c.bf16 %v943_v50, %v941_v49  ;;  %v954_v55 = vld [vmem:[#allocation2 + $0x40] sm:$0xff]  ;;  %v956_v56 = vld [vmem:[#allocation2 + $0x48] sm:$0xff]  ;;  %v964_v60 = vld [vmem:[#allocation2 + $0xd8] sm:$0xff] }
  0x21   :  { %657 = vmatpush3.bf16.xpose.msra.mxu1 %v656_v27  ;;  %627 = vmatprep.subr.bf16.mxu0 %v626_v28  ;;  %v958_v57 = vld [vmem:[#allocation2 + $0x140] sm:$0xff]  ;;  %v960_v58 = vld [vmem:[#allocation2 + $0x148] sm:$0xff]  ;;  %v966_v61 = vld [vmem:[#allocation2 + $0x1d0] sm:$0xff]  ;;  %v636_v63 = vpack.c.bf16 %v956_v56, %v954_v55  ;;  %v638_v7 = vpack.c.bf16 %v964_v60, %v962_v59  ;;  %p788_p11 = por %p787_p10, %p786_p9 }
  0x22   :  { %659 = vmatprep.subr.bf16.mxu1 %v658_v29  ;;  %v968_v62 = vld [vmem:[#allocation2 + $0x1d8] sm:$0xff]  ;;  %v668_v3 = vpack.c.bf16 %v960_v58, %v958_v57  ;;  %v978_v12 = vld [vmem:[#allocation2 + $0x50] sm:$0xff]  ;;  %v986_v27 = vld [vmem:[#allocation2 + $0xe0] sm:$0xff] }
  0x23   :  { %v670_v8 = vpack.c.bf16 %v968_v62, %v966_v61  ;;  %v980_v16 = vld [vmem:[#allocation2 + $0x58] sm:$0xff]  ;;  %v982_v17 = vld [vmem:[#allocation2 + $0x150] sm:$0xff]  ;;  %1197 = vst [vmem:[#allocation8_spill] sm:$0xff] %v986_v27  ;;  %v988_v28 = vld [vmem:[#allocation2 + $0xe8] sm:$0xff]  ;;  %p789_p12 = pnand %p788_p11, %p782_p8 }
  0x24   :  { %v984_v26 = vld [vmem:[#allocation2 + $0x158] sm:$0xff]  ;;  %1198 = vst [vmem:[#allocation9_spill] sm:$0xff] %v988_v28  ;;  %v990_v29 = vld [vmem:[#allocation2 + $0x1e0] sm:$0xff] }
  0x25   :  { %1199 = vst [vmem:[#allocation10_spill] sm:$0xff] %v990_v29 }
  0x28   :  { %629 = vmatpush3.bf16.xpose.msra.mxu0 %v628_v38  ;;  %v992_v38 = vld [vmem:[#allocation2 + $0x1e8] sm:$0xff] }
  0x29   :  { %661 = vmatpush3.bf16.xpose.msra.mxu1 %v660_v39  ;;  %631 = vmatprep.subr.bf16.mxu0 %v630_v40  ;;  %1200 = vst [vmem:[#allocation11_spill] sm:$0xff] %v992_v38  ;;  %v640_v39 = vpack.c.bf16 %v980_v16, %v978_v12  ;;  %v672_v40 = vpack.c.bf16 %v984_v26, %v982_v17 }
  0x2a   :  { %663 = vmatprep.subr.bf16.mxu1 %v662_v41  ;;  %v642_v41 = vpack.c.bf16 %v988_v28, %v986_v27  ;;  %v1016_v28 = vld [vmem:[#allocation2 + $0x1f8] sm:$0xff]  ;;  %v1030_v27 = vld [vmem:[#allocation2 + $0x70] sm:$0xff] }
  0x2b   :  { %1205 = vst [vmem:[#allocation16_spill] sm:$0xff] %v1016_v28 }
  0x30   :  { %633 = vmatpush3.bf16.xpose.msra.mxu0 %v632_v51  ;;  %v674_v51 = vpack.c.bf16 %v992_v38, %v990_v29  ;;  %v249_v38 = vmul.f32 %v839_v0, %v839_v0  ;;  %v250_v29 = vmul.f32 %v841_v1, %v841_v1 }
  0x31   :  { %665 = vmatpush3.bf16.xpose.msra.mxu1 %v664_v52  ;;  %635 = vmatprep.subr.bf16.mxu0 %v634_v53  ;;  %v1002_v52 = vld [vmem:[#allocation2 + $0x60] sm:$0xff]  ;;  %v1004_v53 = vld [vmem:[#allocation2 + $0x68] sm:$0xff] }
  0x32   :  { %667 = vmatprep.subr.bf16.mxu1 %v666_v54  ;;  %1201 = vst [vmem:[#allocation12_spill] sm:$0xff] %v1004_v53  ;;  %v1006_v54 = vld [vmem:[#allocation2 + $0x160] sm:$0xff] }
  0x38   :  { %637 = vmatpush3.bf16.xpose.msra.mxu0 %v636_v63  ;;  %v1008_v63 = vld [vmem:[#allocation2 + $0x168] sm:$0xff] }
  0x39   :  { %669 = vmatpush3.bf16.xpose.msra.mxu1 %v668_v3  ;;  %639 = vmatprep.subr.bf16.mxu0 %v638_v7  ;;  %1202 = vst [vmem:[#allocation13_spill] sm:$0xff] %v1008_v63  ;;  %v1010_v3 = vld [vmem:[#allocation2 + $0xf0] sm:$0xff]  ;;  %v1012_v7 = vld [vmem:[#allocation2 + $0xf8] sm:$0xff] }
  0x3a   :  { %671 = vmatprep.subr.bf16.mxu1 %v670_v8  ;;  %1203 = vst [vmem:[#allocation14_spill] sm:$0xff] %v1012_v7  ;;  %v1014_v8 = vld [vmem:[#allocation2 + $0x1f0] sm:$0xff] }
  0x3b   :  { %1204 = vst [vmem:[#allocation15_spill] sm:$0xff] %v1014_v8 }
  0x40   :  { %641 = vmatpush3.bf16.xpose.msra.mxu0 %v640_v39  ;;  %v644_v39 = vpack.c.bf16 %v1004_v53, %v1002_v52  ;;  %v1032_v53 = vld [vmem:[#allocation2 + $0x78] sm:$0xff] }
  0x41   :  { %673 = vmatpush3.bf16.xpose.msra.mxu1 %v672_v40  ;;  %643 = vmatprep.subr.bf16.mxu0 %v642_v41  ;;  %v676_v40 = vpack.c.bf16 %v1008_v63, %v1006_v54  ;;  %v646_v41 = vpack.c.bf16 %v1012_v7, %v1010_v3  ;;  %v281_v63 = vmul.f32 %v843_v2, %v843_v2 }
  0x42   :  { %675 = vmatprep.subr.bf16.mxu1 %v674_v51  ;;  %v678_v51 = vpack.c.bf16 %v1016_v28, %v1014_v8  ;;  %v282_v7 = vmul.f32 %v847_v4, %v847_v4  ;;  %v1040_v28 = vld [vmem:[#allocation2 + $0x178] sm:$0xff]  ;;  %v648_v0 = vpack.c.bf16 %v1032_v53, %v1030_v27  ;;  %v233_v8 = vmul.f32 %v849_v5, %v849_v5 }
  0x43   :  { %1206 = vst [vmem:[#allocation17_spill] sm:$0xff] %v1040_v28  ;;  %v234_v2 = vmul.f32 %v851_v6, %v851_v6  ;;  %v265_v4 = vmul.f32 %v857_v9, %v857_v9  ;;  %v283_v5 = vmul.f32 %v867_v14, %v867_v14  ;;  %v284_v6 = vmul.f32 %v869_v15, %v869_v15 }
  0x44   :  { %v268_v14 = vmul.f32 %v881_v21, %v881_v21  ;;  %v253_v15 = vmul.f32 %v883_v22, %v883_v22  ;;  %v237_v22 = vmul.f32 %v899_v30, %v899_v30  ;;  %v287_v30 = vmul.f32 %v911_v36, %v911_v36 }
  0x45   :  { %v684_v9 = vpack.c.bf16 %v234_v2, %v233_v8  ;;  %v272_v36 = vmul.f32 %v934_v46, %v934_v46  ;;  %v241_v46 = vmul.f32 %v954_v55, %v954_v55  ;;  %v291_v55 = vmul.f32 %v966_v61, %v966_v61 }
  0x46   :  { %v276_v61 = vmul.f32 %v984_v26, %v984_v26  ;;  %v245_v26 = vmul.f32 %v1002_v52, %v1002_v52  ;;  %v1214_v52 = vld [vmem:[#allocation15_spill] sm:$0xff] }
  0x48   :  { %645 = vmatpush3.bf16.xpose.msra.mxu0 %v644_v39  ;;  %v1038_v39 = vld [vmem:[#allocation2 + $0x170] sm:$0xff] }
  0x49   :  { %677 = vmatpush3.bf16.xpose.msra.mxu1 %v676_v40  ;;  %647 = vmatprep.subr.bf16.mxu0 %v646_v41  ;;  %v680_v1 = vpack.c.bf16 %v1040_v28, %v1038_v39  ;;  %v682_v40 = vpack.c.bf16 %v250_v29, %v249_v38  ;;  %v714_v41 = vpack.c.bf16 %v282_v7, %v281_v63 }
  0x4a   :  { %679 = vmatprep.subr.bf16.mxu1 %v678_v51  ;;  %v266_v51 = vmul.f32 %v859_v10, %v859_v10  ;;  %v251_v28 = vmul.f32 %v861_v11, %v861_v11  ;;  %v252_v29 = vmul.f32 %v865_v13, %v865_v13  ;;  %v718_v7 = vpack.c.bf16 %v284_v6, %v283_v5 }
  0x4b   :  { %v235_v10 = vmul.f32 %v875_v18, %v875_v18  ;;  %v236_v11 = vmul.f32 %v877_v19, %v877_v19  ;;  %v267_v13 = vmul.f32 %v879_v20, %v879_v20  ;;  %v254_v18 = vmul.f32 %v885_v23, %v885_v23 }
  0x4c   :  { %v716_v38 = vpack.c.bf16 %v266_v51, %v265_v4  ;;  %v686_v63 = vpack.c.bf16 %v252_v29, %v251_v28  ;;  %v285_v19 = vmul.f32 %v887_v24, %v887_v24  ;;  %v286_v20 = vmul.f32 %v889_v25, %v889_v25 }
  0x4d   :  { %v688_v21 = vpack.c.bf16 %v236_v11, %v235_v10  ;;  %v720_v28 = vpack.c.bf16 %v268_v14, %v267_v13  ;;  %v690_v8 = vpack.c.bf16 %v254_v18, %v253_v15  ;;  %v238_v23 = vmul.f32 %v901_v31, %v901_v31  ;;  %v1208_v11 = vld [vmem:[#allocation9_spill] sm:$0xff] }
  0x4e   :  { %v269_v24 = vmul.f32 %v903_v32, %v903_v32  ;;  %v270_v25 = vmul.f32 %v905_v33, %v905_v33  ;;  %v288_v31 = vmul.f32 %v913_v37, %v913_v37  ;;  %v239_v33 = vmul.f32 %v923_v42, %v923_v42 }
  0x4f   :  { %v692_v32 = vpack.c.bf16 %v238_v23, %v237_v22  ;;  %v257_v37 = vmul.f32 %v936_v47, %v936_v47  ;;  %v258_v51 = vmul.f32 %v938_v48, %v938_v48  ;;  %v289_v42 = vmul.f32 %v941_v49, %v941_v49 }
  0x50   :  { %649 = vmatpush3.bf16.xpose.msra.mxu0 %v648_v0  ;;  %v722_v0 = vpack.c.bf16 %v286_v20, %v285_v19  ;;  %v726_v4 = vpack.c.bf16 %v288_v31, %v287_v30  ;;  %v242_v47 = vmul.f32 %v956_v56, %v956_v56  ;;  %v273_v48 = vmul.f32 %v958_v57, %v958_v57 }
  0x51   :  { %681 = vmatpush3.bf16.xpose.msra.mxu1 %v680_v1  ;;  %683 = vmatprep.subr.bf16.mxu0 %v682_v40  ;;  %v255_v1 = vmul.f32 %v907_v34, %v907_v34  ;;  %v256_v40 = vmul.f32 %v909_v35, %v909_v35  ;;  %v240_v34 = vmul.f32 %v925_v43, %v925_v43 }
  0x52   :  { %715 = vmatprep.subr.bf16.mxu1 %v714_v41  ;;  %v724_v41 = vpack.c.bf16 %v270_v25, %v269_v24  ;;  %v271_v35 = vmul.f32 %v927_v44, %v927_v44  ;;  %v290_v43 = vmul.f32 %v943_v50, %v943_v50  ;;  %v698_v5 = vpack.c.bf16 %v258_v51, %v257_v37  ;;  %v1213_v24 = vld [vmem:[#allocation14_spill] sm:$0xff] }
  0x53   :  { %v694_v2 = vpack.c.bf16 %v256_v40, %v255_v1  ;;  %v696_v44 = vpack.c.bf16 %v240_v34, %v239_v33  ;;  %v274_v49 = vmul.f32 %v960_v58, %v960_v58  ;;  %v259_v50 = vmul.f32 %v962_v59, %v962_v59  ;;  %v1215_v40 = vld [vmem:[#allocation16_spill] sm:$0xff]  ;;  %v1216_v33 = vld [vmem:[#allocation17_spill] sm:$0xff] }
  0x54   :  { %v728_v29 = vpack.c.bf16 %v272_v36, %v271_v35  ;;  %v730_v6 = vpack.c.bf16 %v290_v43, %v289_v42  ;;  %v292_v56 = vmul.f32 %v968_v62, %v968_v62  ;;  %v700_v57 = vpack.c.bf16 %v242_v47, %v241_v46  ;;  %v1207_v62 = vld [vmem:[#allocation8_spill] sm:$0xff] }
  0x55   :  { %v243_v58 = vmul.f32 %v978_v12, %v978_v12  ;;  %v244_v59 = vmul.f32 %v980_v16, %v980_v16  ;;  %v261_v10 = vmul.f32 %v1207_v62, %v1207_v62  ;;  %v262_v13 = vmul.f32 %v1208_v11, %v1208_v11  ;;  %v1209_v12 = vld [vmem:[#allocation10_spill] sm:$0xff]  ;;  %v1210_v16 = vld [vmem:[#allocation11_spill] sm:$0xff] }
  0x56   :  { %v293_v14 = vmul.f32 %v1209_v12, %v1209_v12  ;;  %v294_v15 = vmul.f32 %v1210_v16, %v1210_v16  ;;  %v263_v23 = vmul.f32 %v1010_v3, %v1010_v3  ;;  %v264_v25 = vmul.f32 %v1213_v24, %v1213_v24 }
  0x57   :  { %515 = vmatmul.mubr.f32.vlgmr.msra.gmra.mrb[0].mxu0 %v932_v45  ;;  %v706_v19 = vpack.c.bf16 %v262_v13, %v261_v10  ;;  %v295_v1 = vmul.f32 %v1214_v52, %v1214_v52  ;;  %v296_v30 = vmul.f32 %v1215_v40, %v1215_v40  ;;  %v248_v3 = vmul.f32 %v1032_v53, %v1032_v53 }
  0x58   :  { %549 = vmatmul.mubr.f32.vlgmr.msra.gmra.mrb[0].mxu1 %v932_v45  ;;  %685 = vmatpush3.bf16.xpose.msra.mxu0 %v684_v9  ;;  %v810_v45 = vmov 1.0   ;;  %v260_v9 = vmul.f32 %v964_v60, %v964_v60  ;;  %v275_v60 = vmul.f32 %v982_v17, %v982_v17  ;;  %v704_v17 = vpack.c.bf16 %v244_v59, %v243_v58 }
  0x59   :  { %717 = vmatpush3.bf16.xpose.msra.mxu1 %v716_v38  ;;  %687 = vmatprep.subr.bf16.mxu0 %v686_v63  ;;  %v732_v38 = vpack.c.bf16 %v274_v49, %v273_v48  ;;  %v738_v20 = vpack.c.bf16 %v294_v15, %v293_v14  ;;  %v280_v34 = vmul.f32 %v1216_v33, %v1216_v33 }
  0x5a   :  { %719 = vmatprep.subr.bf16.mxu1 %v718_v7  ;;  %582 = vmatprep.mubr.f32.mxu0 %v810_v45  ;;  %v702_v63 = vpack.c.bf16 %v260_v9, %v259_v50  ;;  %v734_v7 = vpack.c.bf16 %v292_v56, %v291_v55  ;;  %v736_v18 = vpack.c.bf16 %v276_v61, %v275_v60 }
  0x5b   :  { %616 = vmatprep.mubr.f32.mxu1 %v810_v45 }
  0x60   :  { %689 = vmatpush3.bf16.xpose.msra.mxu0 %v688_v21  ;;  %v1211_v21 = vld [vmem:[#allocation12_spill] sm:$0xff] }
  0x61   :  { %721 = vmatpush3.bf16.xpose.msra.mxu1 %v720_v28  ;;  %691 = vmatprep.subr.bf16.mxu0 %v690_v8  ;;  %v246_v28 = vmul.f32 %v1211_v21, %v1211_v21  ;;  %v277_v8 = vmul.f32 %v1006_v54, %v1006_v54 }
  0x62   :  { %723 = vmatprep.subr.bf16.mxu1 %v722_v0  ;;  %v1212_v0 = vld [vmem:[#allocation13_spill] sm:$0xff] }
  0x63   :  { %v278_v22 = vmul.f32 %v1212_v0, %v1212_v0  ;;  %v708_v54 = vpack.c.bf16 %v246_v28, %v245_v26 }
  0x65   :  { %v740_v31 = vpack.c.bf16 %v278_v22, %v277_v8 }
  0x68   :  { %693 = vmatpush3.bf16.xpose.msra.mxu0 %v692_v32  ;;  %v710_v32 = vpack.c.bf16 %v264_v25, %v263_v23 }
  0x69   :  { %725 = vmatpush3.bf16.xpose.msra.mxu1 %v724_v41  ;;  %695 = vmatprep.subr.bf16.mxu0 %v694_v2  ;;  %v742_v41 = vpack.c.bf16 %v296_v30, %v295_v1  ;;  %v247_v2 = vmul.f32 %v1030_v27, %v1030_v27 }
  0x6a   :  { %727 = vmatprep.subr.bf16.mxu1 %v726_v4  ;;  %v279_v4 = vmul.f32 %v1038_v39, %v1038_v39  ;;  %v443_v39 = vlaneseq }
  0x6b   :  { %v712_v35 = vpack.c.bf16 %v248_v3, %v247_v2 }
  0x6c   :  { %v744_v36 = vpack.c.bf16 %v280_v34, %v279_v4 }
  0x70   :  { %697 = vmatpush3.bf16.xpose.msra.mxu0 %v696_v44 }
  0x71   :  { %729 = vmatpush3.bf16.xpose.msra.mxu1 %v728_v29  ;;  %699 = vmatprep.subr.bf16.mxu0 %v698_v5  ;;  %v444_v5 = vshrl.u32 %v443_v39, 7 }
  0x72   :  { %731 = vmatprep.subr.bf16.mxu1 %v730_v6 }
  0x73   :  { %v445_v6 = vsub.s32 0, %v444_v5 }
  0x78   :  { %701 = vmatpush3.bf16.xpose.msra.mxu0 %v700_v57 }
  0x79   :  { %733 = vmatpush3.bf16.xpose.msra.mxu1 %v732_v38  ;;  %703 = vmatprep.subr.bf16.mxu0 %v702_v63 }
  0x7a   :  { %735 = vmatprep.subr.bf16.mxu1 %v734_v7 }
  0x80   :  { %705 = vmatpush3.bf16.xpose.msra.mxu0 %v704_v17 }
  0x81   :  { %737 = vmatpush3.bf16.xpose.msra.mxu1 %v736_v18  ;;  %707 = vmatprep.subr.bf16.mxu0 %v706_v19 }
  0x82   :  { %739 = vmatprep.subr.bf16.mxu1 %v738_v20 }
  0x88   :  { %709 = vmatpush3.bf16.xpose.msra.mxu0 %v708_v54 }
  0x89   :  { %741 = vmatpush3.bf16.xpose.msra.mxu1 %v740_v31  ;;  %711 = vmatprep.subr.bf16.mxu0 %v710_v32 }
  0x8a   :  { %743 = vmatprep.subr.bf16.mxu1 %v742_v41 }
  0x90   :  { %713 = vmatpush3.bf16.xpose.msra.mxu0 %v712_v35 }
  0x91   :  { %745 = vmatpush3.bf16.xpose.msra.mxu1 %v744_v36 }
  0x97   :  { %583 = vmatmul.mubr.f32.vlgmr.msra.gmra.mrb[2].mxu0 %v810_v45 }
  0x98   :  { %617 = vmatmul.mubr.f32.vlgmr.msra.gmra.mrb[2].mxu1 %v810_v45 }
 0x12a   :  { %v157_v27 = vpop.f32.mrb[0].mxu0 }
 0x12b   :  { %v228_v53 = vpop.f32.mrb[0].mxu1  ;;  %v159_v37 = vpop.f32.mrb[1].mxu0 }
 0x12c   :  { %v230_v51 = vpop.f32.mrb[1].mxu1 }
 0x16a   :  { %v363_v42 = vpop.f32.mrb[2].mxu0 }
 0x16b   :  { %751 = vrsqrt.f32 %v363_v42  ;;  %v434_v43 = vpop.f32.mrb[2].mxu1  ;;  %v365_v44 = vpop.f32.mrb[3].mxu0 }
 0x16c   :  { %753 = vrsqrt.f32 %v434_v43  ;;  %v436_v29 = vpop.f32.mrb[3].mxu1 }
 0x16d   :  { %755 = vrsqrt.f32 %v365_v44 }
 0x16e   :  { %757 = vrsqrt.f32 %v436_v29 }
 0x175   :  { %v752_v46 = vpop.eup %751 }
 0x176   :  { %v754_v47 = vpop.eup %753  ;;  %v446_v48 = vrot.slane %v752_v46, %v445_v6 }
 0x177   :  { %v756_v49 = vpop.eup %755  ;;  %v454_v45 = vrot.slane %v754_v47, %v445_v6 }
 0x178   :  { %v758_v50 = vpop.eup %757  ;;  %v450_v9 = vrot.slane %v756_v49, %v445_v6  ;;  %v459_v55 = vmul.f32 %v446_v48, %v157_v27 }
 0x179   :  { %v458_v56 = vrot.slane %v758_v50, %v445_v6  ;;  %v461_v57 = vmul.f32 %v454_v45, %v228_v53 }
 0x17a   :  { %v460_v38 = vmul.f32 %v450_v9, %v159_v37  ;;  %463 = vst [vmem:[#allocation5] sm:$0xff] %v459_v55 }
 0x17b   :  { %v462_v63 = vmul.f32 %v458_v56, %v230_v51  ;;  %465 = vst [vmem:[#allocation5 + $0x10] sm:$0xff] %v461_v57 }
 0x17c   :  { %464 = vst [vmem:[#allocation5 + $0x8] sm:$0xff] %v460_v38 }
 0x17d   :  { %466 = vst [vmem:[#allocation5 + $0x18] sm:$0xff] %v462_v63 }
 0x17e   :  { %792 = shalt.err (!%p789_p12)
}
 0x17f   :  { %s793_s28 = scalar_lea.hbm %s1186_s2, 512 }
 0x180   :  { %p794_p13 = scmp.ne.s32.totalorder %s1186_s2, %s793_s28  ;;  %p797_p0 = scmp.lt.u32.totalorder %s793_s28, %s1186_s2 }
 0x182   :  { %p799_p1 = pnand %p797_p0, %p794_p13 }
 0x184   :  { %802 = shalt.err (!%p799_p1)
}
 0x185   :  { %476 = dma.vmem_to_hbm [thread:$0]  %s474_s24, 512, %s1186_s2, [#allocation4]  }
 0x186   :  { %805 = dma.done.wait [#allocation4], 512  }
 0x187   :  { %806 = vsyncadd [#allocation4], 4294966784 }
 0x188   :  { %480 = vsyncpa [#allocation3], 1 }
 0x189   :  { %481 = vsyncpa [#allocation4], 1 }

// kernel: analogy_forward_train.2
= control target key start
LH: loop header
LB: loop body
LE: loop exit
PB: predicated region body
PF: predicated region fallthrough
CT: control target
= control target key end

     0   :  { %11 = vsyncpa [#allocation3], 0  ;;  %s682_s0 = inlined_call_operand.vmem [shape: f32[8,128], index: 0, kind: input, shape index: {}]   ;;  %s683_s1 = inlined_call_operand.vmem [shape: f32[8,128], index: 1, kind: input, shape index: {}]   ;;  %s684_s2 = inlined_call_operand.vmem [shape: f32[8,128], index: 2, kind: output, shape index: {0}]   ;;  %s685_s3 = inlined_call_operand.hbm [shape: f32[8,128], index: 3, kind: output, shape index: {1}]   ;;  %s686_s4 = inlined_call_operand.hbm [shape: f32[8,128], index: 4, kind: output, shape index: {2}]   ;;  %s687_s5 = inlined_call_operand.hbm [shape: f32[8,128], index: 5, kind: output, shape index: {3}]  }
   0x1   :  { %v17_v0 = vld [vmem:[%s682_s0] sm:$0xff] }
   0x2   :  { %12 = vsyncpa [#allocation5], 0  ;;  %v18_v1 = vmul.f32 %v17_v0, %v17_v0  ;;  %v568_v2 = vmov 0.0   ;;  %vm569_vm0 = vmmov 0   ;;  %vm96_vm1 = vcmask 64512   ;;  %v216_v27 = vld [vmem:[%s683_s1] sm:$0xff] }
   0x3   :  { %469 = vmatprep.subr.mxu0 %v568_v2  ;;  %474 = vmatprep.subr.mxu1 %v568_v2  ;;  %v94_v9 = vlaneseq  ;;  %v217_v28 = vmul.f32 %v216_v27, %v216_v27  ;;  %s570_s1 = smov [#allocation4]   ;;  %s571_s23 = smov [#allocation2]  }
   0x4   :  { %19 = vadd.xlane.f32.xlu0 %v18_v1  ;;  %471 = vmatprep.mubr.msk.f32.mxu0 %vm569_vm0, %v568_v2  ;;  %s430_s22 = sshll.u32 %s570_s1, 4  ;;  %s420_s24 = sshll.u32 %s571_s23, 4  ;;  %s431_s22 = int_to_ptr.vmem [resolvable:$true] %s430_s22  ;;  %s421_s24 = int_to_ptr.vmem [resolvable:$true] %s420_s24 }
   0x5   :  { %476 = vmatprep.mubr.msk.f32.mxu1 %vm569_vm0, %v568_v2  ;;  %v620_v10 = vand.u32 127, %v94_v9  ;;  %s498_s25 = scalar_lea.vmem %s431_s22, 128  ;;  %p503_p1 = scmp.lt.s32.totalorder %s431_s22, %s431_s22 }
   0x6   :  { %p499_p0 = scmp.ne.s32.totalorder %s431_s22, %s498_s25  ;;  %p504_p2 = scmp.lt.s32.totalorder %s498_s25, %s498_s25 }
   0x8   :  { %p505_p3 = por %p504_p2, %p503_p1 }
   0xa   :  { %p506_p4 = pnand %p505_p3, %p499_p0 }
  0x91   :  { %v20_v3 = vpop.xlane.xlu0 %19 }
  0x92   :  { %494 = vrsqrt.f32 %v20_v3 }
  0x9c   :  { %v495_v4 = vpop.eup %494 }
  0x9d   :  { %v22_v5 = vmul.f32 %v495_v4, %v17_v0 }
  0x9f   :  { %23 = vst [vmem:[%s684_s2] sm:$0xff] %v22_v5  ;;  %470 = vmatpush3.xpose.msra.mxu0 %v22_v5  ;;  %475 = vmatpush3.msra.mxu1 %v22_v5 }
  0xa0   :  { %479 = vmatprep.subr.mxu1 %v568_v2  ;;  %484 = vmatprep.subr.mxu0 %v568_v2 }
  0xa2   :  { %472 = vmatmul.mubr.f32.vlgmr.msra.gmra.mrb[0].mxu0 %v22_v5 }
  0xa3   :  { %486 = vmatprep.mubr.msk.f32.mxu0 %vm569_vm0, %v568_v2 }
 0x175   :  { %v90_v6 = vpop.f32.mrb[0].mxu0 }
 0x176   :  { %v473_v7 = vpop.f32.mrb[1].mxu0  ;;  %v97_v8 = vsel %vm96_vm1, %v90_v6, -inf }
 0x177   :  { %98 = vmax.xlane.f32.xlu0 %v97_v8 }
 0x204   :  { %v99_v11 = vpop.xlane.xlu0 %98 }
 0x205   :  { %vm100_vm2 = vcmp.eq.f32.partialorder %v90_v6, %v99_v11 }
 0x206   :  { %v101_v12 = vsel %vm100_vm2, %v620_v10, 8 }
 0x207   :  { %v102_v13 = vsel %vm96_vm1, %v101_v12, 2147483647 }
 0x208   :  { %v104_v14 = vshra.s32 %v102_v13, 16  ;;  %v103_v16 = vand.u32 65535, %v102_v13 }
 0x20a   :  { %v106_v15 = vcvt.s32.f32 %v104_v14  ;;  %v105_v18 = vcvt.s32.f32 %v103_v16 }
 0x20c   :  { %107 = vmin.xlane.f32.xlu1 %v106_v15 }
 0x299   :  { %v108_v17 = vpop.xlane.xlu1 %107 }
 0x29a   :  { %vm109_vm3 = vcmp.eq.f32.partialorder %v106_v15, %v108_v17  ;;  %v114_v20 = vcvt.f32.s32 %v108_v17 }
 0x29b   :  { %v110_v19 = vsel %vm109_vm3, %v105_v18, inf }
 0x29c   :  { %111 = vmin.xlane.f32.xlu1 %v110_v19  ;;  %v115_v22 = vshll.u32 %v114_v20, 16 }
 0x329   :  { %v112_v21 = vpop.xlane.xlu1 %111 }
 0x32a   :  { %v113_v23 = vcvt.f32.s32 %v112_v21 }
 0x32c   :  { %v116_v24 = vadd.s32 %v115_v22, %v113_v23 }
 0x32e   :  { %vm117_vm4 = vcmp.eq.s32.totalorder %v620_v10, %v116_v24 }
 0x32f   :  { %v118_v25 = vsel %vm117_vm4, -3.4e+38, %v90_v6 }
 0x330   :  { %v119_v26 = vsel %vm96_vm1, %v118_v25, -inf }
 0x331   :  { %120 = vmax.xlane.f32.xlu0 %v119_v26 }
 0x335   :  { %218 = vadd.xlane.f32.xlu0 %v217_v28 }
 0x3be   :  { %v121_v29 = vpop.xlane.xlu0 %120 }
 0x3bf   :  { %vm122_vm5 = vcmp.eq.f32.partialorder %v118_v25, %v121_v29 }
 0x3c0   :  { %v123_v30 = vsel %vm122_vm5, %v620_v10, 8 }
 0x3c1   :  { %v124_v31 = vsel %vm96_vm1, %v123_v30, 2147483647 }
 0x3c2   :  { %v126_v32 = vshra.s32 %v124_v31, 16  ;;  %v125_v34 = vand.u32 65535, %v124_v31  ;;  %v219_v38 = vpop.xlane.xlu0 %218 }
 0x3c3   :  { %496 = vrsqrt.f32 %v219_v38 }
 0x3c4   :  { %v128_v33 = vcvt.s32.f32 %v126_v32  ;;  %v127_v36 = vcvt.s32.f32 %v125_v34 }
 0x3c6   :  { %129 = vmin.xlane.f32.xlu1 %v128_v33 }
 0x3cd   :  { %v497_v39 = vpop.eup %496 }
 0x3ce   :  { %v221_v40 = vmul.f32 %v497_v39, %v216_v27 }
 0x3d0   :  { %222 = vst [vmem:[#allocation2] sm:$0xff] %v221_v40  ;;  %485 = vmatpush3.msra.mxu0 %v221_v40 }
 0x453   :  { %v130_v35 = vpop.xlane.xlu1 %129 }
 0x454   :  { %vm131_vm6 = vcmp.eq.f32.partialorder %v128_v33, %v130_v35  ;;  %v136_v41 = vcvt.f32.s32 %v130_v35 }
 0x455   :  { %v132_v37 = vsel %vm131_vm6, %v127_v36, inf }
 0x456   :  { %133 = vmin.xlane.f32.xlu1 %v132_v37  ;;  %v137_v43 = vshll.u32 %v136_v41, 16 }
 0x4e3   :  { %v134_v42 = vpop.xlane.xlu1 %133 }
 0x4e4   :  { %v135_v44 = vcvt.f32.s32 %v134_v42 }
 0x4e6   :  { %v138_v45 = vadd.s32 %v137_v43, %v135_v44 }
 0x4e8   :  { %vm139_vm7 = vcmp.eq.s32.totalorder %v620_v10, %v138_v45 }
 0x4e9   :  { %v457_v46 = vsel %vm139_vm7, 1.0, %v568_v2 }
 0x4ea   :  { %477 = vmatmul.mubr.msk.f32.vlgmr.msra.gmra.mrb[0].mxu1 %vm96_vm1, %v457_v46 }
 0x4eb   :  { %480 = vmatpush3.xpose.msra.mxu1 %v221_v40  ;;  %481 = vmatprep.mubr.msk.f32.mxu1 %vm569_vm0, %v568_v2 }
 0x4ee   :  { %482 = vmatmul.mubr.f32.vlgmr.msra.gmra.mrb[2].mxu1 %v221_v40 }
 0x5bd   :  { %v211_v47 = vpop.f32.mrb[0].mxu1 }
 0x5be   :  { %215 = vst [vmem:[#allocation4] sm:$0xff] %v211_v47  ;;  %v478_v48 = vpop.f32.mrb[1].mxu1 }
 0x5c1   :  { %v289_v49 = vpop.f32.mrb[2].mxu1 }
 0x5c2   :  { %v483_v50 = vpop.f32.mrb[3].mxu1  ;;  %v293_v51 = vsel %vm96_vm1, %v289_v49, -inf }
 0x5c3   :  { %294 = vmax.xlane.f32.xlu0 %v293_v51 }
 0x650   :  { %v295_v52 = vpop.xlane.xlu0 %294 }
 0x651   :  { %vm296_vm8 = vcmp.eq.f32.partialorder %v289_v49, %v295_v52 }
 0x652   :  { %v297_v53 = vsel %vm296_vm8, %v620_v10, 8 }
 0x653   :  { %v298_v54 = vsel %vm96_vm1, %v297_v53, 2147483647 }
 0x654   :  { %v300_v55 = vshra.s32 %v298_v54, 16  ;;  %v299_v57 = vand.u32 65535, %v298_v54 }
 0x656   :  { %v302_v56 = vcvt.s32.f32 %v300_v55  ;;  %v301_v59 = vcvt.s32.f32 %v299_v57 }
 0x658   :  { %303 = vmin.xlane.f32.xlu1 %v302_v56 }
 0x6e5   :  { %v304_v58 = vpop.xlane.xlu1 %303 }
 0x6e6   :  { %vm305_vm9 = vcmp.eq.f32.partialorder %v302_v56, %v304_v58  ;;  %v310_v61 = vcvt.f32.s32 %v304_v58 }
 0x6e7   :  { %v306_v60 = vsel %vm305_vm9, %v301_v59, inf }
 0x6e8   :  { %307 = vmin.xlane.f32.xlu0 %v306_v60  ;;  %v311_v63 = vshll.u32 %v310_v61, 16 }
 0x775   :  { %v308_v62 = vpop.xlane.xlu0 %307 }
 0x776   :  { %v309_v0 = vcvt.f32.s32 %v308_v62 }
 0x778   :  { %v312_v1 = vadd.s32 %v311_v63, %v309_v0 }
 0x77a   :  { %vm313_vm10 = vcmp.eq.s32.totalorder %v620_v10, %v312_v1 }
 0x77b   :  { %v314_v3 = vsel %vm313_vm10, -3.4e+38, %v289_v49 }
 0x77c   :  { %v315_v4 = vsel %vm96_vm1, %v314_v3, -inf }
 0x77d   :  { %316 = vmax.xlane.f32.xlu1 %v315_v4 }
 0x80a   :  { %v317_v5 = vpop.xlane.xlu1 %316 }
 0x80b   :  { %vm318_vm11 = vcmp.eq.f32.partialorder %v314_v3, %v317_v5 }
 0x80c   :  { %v319_v6 = vsel %vm318_vm11, %v620_v10, 8 }
 0x80d   :  { %v320_v7 = vsel %vm96_vm1, %v319_v6, 2147483647 }
 0x80e   :  { %v322_v8 = vshra.s32 %v320_v7, 16  ;;  %v321_v11 = vand.u32 65535, %v320_v7 }
 0x810   :  { %v324_v9 = vcvt.s32.f32 %v322_v8  ;;  %v323_v13 = vcvt.s32.f32 %v321_v11 }
 0x812   :  { %325 = vmin.xlane.f32.xlu0 %v324_v9 }
 0x89f   :  { %v326_v12 = vpop.xlane.xlu0 %325 }
 0x8a0   :  { %vm327_vm12 = vcmp.eq.f32.partialorder %v324_v9, %v326_v12  ;;  %v332_v15 = vcvt.f32.s32 %v326_v12 }
 0x8a1   :  { %v328_v14 = vsel %vm327_vm12, %v323_v13, inf }
 0x8a2   :  { %329 = vmin.xlane.f32.xlu1 %v328_v14  ;;  %v333_v17 = vshll.u32 %v332_v15, 16 }
 0x92f   :  { %v330_v16 = vpop.xlane.xlu1 %329 }
 0x930   :  { %v331_v18 = vcvt.f32.s32 %v330_v16 }
 0x932   :  { %v334_v19 = vadd.s32 %v333_v17, %v331_v18 }
 0x934   :  { %vm335_vm13 = vcmp.eq.s32.totalorder %v620_v10, %v334_v19 }
 0x935   :  { %v459_v20 = vsel %vm335_vm13, 1.0, %v568_v2 }
 0x936   :  { %487 = vmatmul.mubr.msk.f32.vlgmr.msra.gmra.mrb[2].mxu0 %vm96_vm1, %v459_v20 }
 0x937   :  { %509 = shalt.err (!%p506_p4)
}
 0x938   :  { %s510_s28 = scalar_lea.hbm %s686_s4, 128 }
 0x939   :  { %p511_p5 = scmp.ne.s32.totalorder %s686_s4, %s510_s28  ;;  %p514_p6 = scmp.lt.u32.totalorder %s510_s28, %s686_s4 }
 0x93b   :  { %p516_p7 = pnand %p514_p6, %p511_p5 }
 0x93d   :  { %519 = shalt.err (!%p516_p7)
}
 0x93e   :  { %433 = dma.vmem_to_hbm [thread:$0]  %s431_s22, 128, %s686_s4, [#allocation5]  }
 0x93f   :  { %s520_s10 = scalar_lea.vmem %s421_s24, 128  ;;  %p525_p9 = scmp.lt.s32.totalorder %s421_s24, %s421_s24 }
 0x940   :  { %p521_p8 = scmp.ne.s32.totalorder %s421_s24, %s520_s10  ;;  %p526_p10 = scmp.lt.s32.totalorder %s520_s10, %s520_s10 }
 0x942   :  { %p527_p11 = por %p526_p10, %p525_p9 }
 0x944   :  { %p528_p12 = pnand %p527_p11, %p521_p8 }
 0x946   :  { %531 = shalt.err (!%p528_p12)
}
 0x947   :  { %s532_s13 = scalar_lea.hbm %s685_s3, 128 }
 0x948   :  { %p533_p13 = scmp.ne.s32.totalorder %s685_s3, %s532_s13  ;;  %p536_p0 = scmp.lt.u32.totalorder %s532_s13, %s685_s3 }
 0x94a   :  { %p538_p1 = pnand %p536_p0, %p533_p13 }
 0x94c   :  { %541 = shalt.err (!%p538_p1)
}
 0x94d   :  { %423 = dma.vmem_to_hbm [thread:$0]  %s421_s24, 128, %s685_s3, [#allocation3]  }
 0x94e   :  { %s572_s19 = smov [#allocation6]  }
 0x94f   :  { %s440_s0 = sshll.u32 %s572_s19, 4  ;;  %s441_s0 = int_to_ptr.vmem [resolvable:$true] %s440_s0 }
 0x950   :  { %s542_s20 = scalar_lea.vmem %s441_s0, 128  ;;  %p547_p3 = scmp.lt.s32.totalorder %s441_s0, %s441_s0 }
 0x951   :  { %p543_p2 = scmp.ne.s32.totalorder %s441_s0, %s542_s20  ;;  %p548_p4 = scmp.lt.s32.totalorder %s542_s20, %s542_s20 }
 0x953   :  { %p549_p5 = por %p548_p4, %p547_p3 }
 0x955   :  { %p550_p6 = pnand %p549_p5, %p543_p2 }
 0xa09   :  { %v407_v2 = vpop.f32.mrb[2].mxu0 }
 0xa0a   :  { %411 = vst [vmem:[#allocation6] sm:$0xff] %v407_v2  ;;  %v488_v10 = vpop.f32.mrb[3].mxu0 }
 0xa0b   :  { %553 = shalt.err (!%p550_p6)
}
 0xa0c   :  { %s554_s1 = scalar_lea.hbm %s687_s5, 128 }
 0xa0d   :  { %p555_p7 = scmp.ne.s32.totalorder %s687_s5, %s554_s1  ;;  %p558_p8 = scmp.lt.u32.totalorder %s554_s1, %s687_s5 }
 0xa0f   :  { %p560_p9 = pnand %p558_p8, %p555_p7 }
 0xa11   :  { %563 = shalt.err (!%p560_p9)
}
 0xa12   :  { %443 = dma.vmem_to_hbm [thread:$0]  %s441_s0, 128, %s687_s5, [#allocation5]  }
 0xa13   :  { %564 = dma.done.wait [#allocation3], 128  }
 0xa14   :  { %565 = vsyncadd [#allocation3], 4294967168 }
 0xa15   :  { %566 = dma.done.wait [#allocation5], 256  }
 0xa16   :  { %567 = vsyncadd [#allocation5], 4294967040 }
 0xa17   :  { %455 = vsyncpa [#allocation3], 1 }
 0xa18   :  { %456 = vsyncpa [#allocation5], 1 }

</bundles_post_ra>
